<compile_context>
chip_gen: v5e
topology: v5e:2x2
jax: 0.10.0
libtpu: 0.0.40
codegen_flags: <defaults>
</compile_context>

<pallas_src>
import jax
import jax.numpy as jnp
from jax.experimental import pallas as pl
from jax.experimental.pallas import tpu as pltpu


def _round_up(n, m):
    return ((n + m - 1) // m) * m


# ---------------------------------------------------------------------------
# Pallas kernel: fused 3-layer MLP  tanh(tanh(x@W1+b1)@W2+b2)@W3+b3
# ---------------------------------------------------------------------------
def _mlp_kernel(x_ref, w1_ref, b1_ref, w2_ref, b2_ref, w3_ref, b3_ref, o_ref):
    # Layer 1: (tm, 784) @ (784, N1P), f32 accumulation on the MXU.
    h = jnp.dot(x_ref[...], w1_ref[...], preferred_element_type=jnp.float32)
    h = jnp.tanh(h + b1_ref[...])                      # bias + tanh in f32 (EUP)
    # Layer 2: cast the hidden back to the MXU input dtype (bf16).
    h = jnp.dot(h.astype(w2_ref.dtype), w2_ref[...],
                preferred_element_type=jnp.float32)
    h = jnp.tanh(h + b2_ref[...])
    # Layer 3
    y = jnp.dot(h.astype(w3_ref.dtype), w3_ref[...],
                preferred_element_type=jnp.float32)
    o_ref[...] = (y + b3_ref[...]).astype(o_ref.dtype)


# ---------------------------------------------------------------------------
# One-time parameter preprocessing (transpose + pad + cast), hoisted out of
# the per-call path.  Padded weight rows/cols and bias lanes are zero, so the
# padded hidden lanes are exactly tanh(0) = 0 and contribute nothing.
# ---------------------------------------------------------------------------
def prepare_params(params, *, compute_dtype=jnp.bfloat16):
    w1, b1 = params["w1"], params["b1"]                 # torch: (300, 784), (300,)
    w2, b2 = params["w2"], params["b2"]                 # (100, 300), (100,)
    w3, b3 = params["w3"], params["b3"]                 # (C, 100),   (C,)

    K = w1.shape[1]                                      # 784 (not padded)
    N1P = _round_up(w1.shape[0], 128)                    # 300 -> 384
    N2P = _round_up(w2.shape[0], 128)                    # 100 -> 128
    N3P = _round_up(w3.shape[0], 128)                    # 10  -> 128

    def padw(w, rows, cols):
        wt = w.T.astype(compute_dtype)
        return jnp.pad(wt, ((0, rows - wt.shape[0]), (0, cols - wt.shape[1])))

    def padb(b, cols):
        b2d = b.reshape(1, -1).astype(jnp.float32)       # biases stay f32
        return jnp.pad(b2d, ((0, 0), (0, cols - b2d.shape[1])))

    return {
        "w1": padw(w1, K, N1P),   "b1": padb(b1, N1P),
        "w2": padw(w2, N1P, N2P), "b2": padb(b2, N2P),
        "w3": padw(w3, N2P, N3P), "b3": padb(b3, N3P),
        "n_out": int(w3.shape[0]),
        "compute_dtype": compute_dtype,
    }


# ---------------------------------------------------------------------------
# Forward wrapper
# ---------------------------------------------------------------------------
def lenet300100_forward(x, prep, *, block_m=512):
    """x: any shape (B, ...) flattening to (B, 784). Returns (B, classes)."""
    compute_dtype = prep["compute_dtype"]
    B = x.shape[0]
    x2 = x.reshape(B, -1).astype(compute_dtype)          # torch.flatten(x, 1)
    K = x2.shape[1]

    w1p, b1p = prep["w1"], prep["b1"]
    w2p, b2p = prep["w2"], prep["b2"]
    w3p, b3p = prep["w3"], prep["b3"]
    n_out = prep["n_out"]
    assert w1p.shape[0] == K, (w1p.shape, K)

    N1P, N2P, N3P = w1p.shape[1], w2p.shape[1], w3p.shape[1]

    # Batch tiling: sublane-aligned (multiple of 8), capped at block_m, and
    # sized so the grid has >= 2 steps when B allows (keeps both v7x TCs busy).
    tm = max(8, min(block_m, _round_up(pl.cdiv(B, 2), 8)))
    grid_m = pl.cdiv(B, tm)

    itemsize = jnp.dtype(compute_dtype).itemsize
    cost = pl.CostEstimate(
        flops=2 * B * (K * N1P + N1P * N2P + N2P * N3P),
        transcendentals=B * (N1P + N2P),
        bytes_accessed=(B * K + K * N1P + N1P * N2P + N2P * N3P) * itemsize
        + B * N3P * 4,
    )

    def resident(shape):
        # Constant index_map -> weight/bias tile stays resident in VMEM.
        return pl.BlockSpec(shape, lambda i: (0, 0))

    out = pl.pallas_call(
        _mlp_kernel,
        out_shape=jax.ShapeDtypeStruct((B, N3P), jnp.float32),
        grid=(grid_m,),
        in_specs=[
            pl.BlockSpec((tm, K), lambda i: (i, 0)),     # x: streamed over batch
            resident((K, N1P)), resident((1, N1P)),      # W1, b1
            resident((N1P, N2P)), resident((1, N2P)),    # W2, b2
            resident((N2P, N3P)), resident((1, N3P)),    # W3, b3
        ],
        out_specs=pl.BlockSpec((tm, N3P), lambda i: (i, 0)),
        compiler_params=pltpu.CompilerParams(
            dimension_semantics=("parallel",),
            vmem_limit_bytes=32 * 1024 * 1024,
        ),
        cost_estimate=cost,
    )(x2, w1p, b1p, w2p, b2p, w3p, b3p)

    return out[:, :n_out]


# ---------------------------------------------------------------------------
# Parameter init (matches PyTorch nn.Linear default: U(-1/sqrt(fan_in), ...))
# ---------------------------------------------------------------------------
def init_params(key, classification=10):
    ks = jax.random.split(key, 6)

    def u(k, shape, fan_in):
        bound = 1.0 / jnp.sqrt(fan_in)
        return jax.random.uniform(k, shape, jnp.float32, -bound, bound)

    return {
        "w1": u(ks[0], (300, 28 * 28 * 1), 28 * 28),
        "b1": u(ks[1], (300,), 28 * 28),
        "w2": u(ks[2], (100, 300), 300),
        "b2": u(ks[3], (100,), 300),
        "w3": u(ks[4], (classification, 100), 100),
        "b3": u(ks[5], (classification,), 100),
    }


# ---------------------------------------------------------------------------
# Pure-JAX f32 reference (for correctness check)
# ---------------------------------------------------------------------------
def _reference_forward(x, params):
    h = x.reshape(x.shape[0], -1).astype(jnp.float32)
    h = jnp.tanh(h @ params["w1"].T + params["b1"])
    h = jnp.tanh(h @ params["w2"].T + params["b2"])
    return h @ params["w3"].T + params["b3"]


if __name__ == "__main__":
    key = jax.random.PRNGKey(0)
    k_param, k_x = jax.random.split(key)

    # LeNet-300-100 expects inputs that flatten to 784 features per example.
    x = jax.random.normal(k_x, (2, 1, 28, 28), dtype=jnp.float32)
    params = init_params(k_param, classification=10)

    prep = prepare_params(params, compute_dtype=jnp.bfloat16)
    out = lenet300100_forward(x, prep)
    out = jax.block_until_ready(out)

    assert out.shape == (2, 10), out.shape
    assert bool(jnp.all(jnp.isfinite(out)))

    ref = _reference_forward(x, params)
    # bf16 MXU inputs with f32 accumulation: loosened tolerance vs f32 reference.
    assert bool(jnp.allclose(out, ref, atol=5e-2, rtol=5e-2)), (
        float(jnp.max(jnp.abs(out - ref))))

    print("KERNEL_OK")
</pallas_src>

<mosaic_0001>
module attributes {stable_mosaic.version = 11 : i64} {
  func.func @_mlp_kernel(%arg0: i32, %arg1: memref<8x784xbf16, #tpu.memory_space<vmem>>, %arg2: memref<784x384xbf16, #tpu.memory_space<vmem>>, %arg3: memref<1x384xf32, #tpu.memory_space<vmem>>, %arg4: memref<384x128xbf16, #tpu.memory_space<vmem>>, %arg5: memref<1x128xf32, #tpu.memory_space<vmem>>, %arg6: memref<128x128xbf16, #tpu.memory_space<vmem>>, %arg7: memref<1x128xf32, #tpu.memory_space<vmem>>, %arg8: memref<8x128xf32, #tpu.memory_space<vmem>>) attributes {dimension_semantics = [#tpu.dimension_semantics<parallel>], iteration_bounds = array<i64: 1>, scalar_prefetch = 0 : i64, scratch_operands = 0 : i64, tpu.core_type = #tpu.core_type<tc>, window_params = [{transform_indices = @transform_0, window_bounds = array<i64: 8, 784>}, {pipeline_mode = #tpu.pipeline_mode<synchronous>, transform_indices = @transform_1, window_bounds = array<i64: 784, 384>}, {pipeline_mode = #tpu.pipeline_mode<synchronous>, transform_indices = @transform_2, window_bounds = array<i64: 1, 384>}, {pipeline_mode = #tpu.pipeline_mode<synchronous>, transform_indices = @transform_3, window_bounds = array<i64: 384, 128>}, {pipeline_mode = #tpu.pipeline_mode<synchronous>, transform_indices = @transform_4, window_bounds = array<i64: 1, 128>}, {pipeline_mode = #tpu.pipeline_mode<synchronous>, transform_indices = @transform_5, window_bounds = array<i64: 128, 128>}, {pipeline_mode = #tpu.pipeline_mode<synchronous>, transform_indices = @transform_6, window_bounds = array<i64: 1, 128>}, {transform_indices = @transform_7, window_bounds = array<i64: 8, 128>}]} {
    %c0 = arith.constant 0 : index
    %c0_0 = arith.constant 0 : index
    %0 = vector.load %arg1[%c0, %c0_0] : memref<8x784xbf16, #tpu.memory_space<vmem>>, vector<8x784xbf16>
    %c0_1 = arith.constant 0 : index
    %c0_2 = arith.constant 0 : index
    %1 = vector.load %arg2[%c0_1, %c0_2] : memref<784x384xbf16, #tpu.memory_space<vmem>>, vector<784x384xbf16>
    %cst = arith.constant dense<0.000000e+00> : vector<8x384xf32>
    %2 = tpu.matmul %0, %1, %cst {dimension_numbers = #tpu.dot_dimension_numbers<[1], [0], [0], [1], [0, 0, 1, 1], [], []>} : vector<8x784xbf16>, vector<784x384xbf16>, vector<8x384xf32> -> vector<8x384xf32>
    %c0_3 = arith.constant 0 : index
    %c0_4 = arith.constant 0 : index
    %3 = vector.load %arg3[%c0_3, %c0_4] : memref<1x384xf32, #tpu.memory_space<vmem>>, vector<1x384xf32>
    %4 = vector.broadcast %3 : vector<1x384xf32> to vector<8x384xf32>
    %5 = arith.addf %2, %4 : vector<8x384xf32>
    %6 = math.tanh %5 : vector<8x384xf32>
    %7 = arith.truncf %6 : vector<8x384xf32> to vector<8x384xbf16>
    %c0_5 = arith.constant 0 : index
    %c0_6 = arith.constant 0 : index
    %8 = vector.load %arg4[%c0_5, %c0_6] : memref<384x128xbf16, #tpu.memory_space<vmem>>, vector<384x128xbf16>
    %cst_7 = arith.constant dense<0.000000e+00> : vector<8x128xf32>
    %9 = tpu.matmul %7, %8, %cst_7 {dimension_numbers = #tpu.dot_dimension_numbers<[1], [0], [0], [1], [0, 0, 1, 1], [], []>} : vector<8x384xbf16>, vector<384x128xbf16>, vector<8x128xf32> -> vector<8x128xf32>
    %c0_8 = arith.constant 0 : index
    %c0_9 = arith.constant 0 : index
    %10 = vector.load %arg5[%c0_8, %c0_9] : memref<1x128xf32, #tpu.memory_space<vmem>>, vector<1x128xf32>
    %11 = vector.broadcast %10 : vector<1x128xf32> to vector<8x128xf32>
    %12 = arith.addf %9, %11 : vector<8x128xf32>
    %13 = math.tanh %12 : vector<8x128xf32>
    %14 = arith.truncf %13 : vector<8x128xf32> to vector<8x128xbf16>
    %c0_10 = arith.constant 0 : index
    %c0_11 = arith.constant 0 : index
    %15 = vector.load %arg6[%c0_10, %c0_11] : memref<128x128xbf16, #tpu.memory_space<vmem>>, vector<128x128xbf16>
    %cst_12 = arith.constant dense<0.000000e+00> : vector<8x128xf32>
    %16 = tpu.matmul %14, %15, %cst_12 {dimension_numbers = #tpu.dot_dimension_numbers<[1], [0], [0], [1], [0, 0, 1, 1], [], []>} : vector<8x128xbf16>, vector<128x128xbf16>, vector<8x128xf32> -> vector<8x128xf32>
    %c0_13 = arith.constant 0 : index
    %c0_14 = arith.constant 0 : index
    %17 = vector.load %arg7[%c0_13, %c0_14] : memref<1x128xf32, #tpu.memory_space<vmem>>, vector<1x128xf32>
    %18 = vector.broadcast %17 : vector<1x128xf32> to vector<8x128xf32>
    %19 = arith.addf %16, %18 : vector<8x128xf32>
    %c0_15 = arith.constant 0 : index
    %c0_16 = arith.constant 0 : index
    %20 = vector.load %arg8[%c0_15, %c0_16] : memref<8x128xf32, #tpu.memory_space<vmem>>, vector<8x128xf32>
    tpu.vector_store %arg8[%c0_15, %c0_16], %19 {strides = array<i32>} : memref<8x128xf32, #tpu.memory_space<vmem>>, vector<8x128xf32>,
    return
  }
  func.func @transform_0(%arg0: i32) -> (i32, i32) {
    %c0_i32 = arith.constant 0 : i32
    %c0_i32_0 = arith.constant 0 : i32
    return %arg0, %c0_i32 : i32, i32
  }
  func.func @transform_1(%arg0: i32) -> (i32, i32) {
    %c0_i32 = arith.constant 0 : i32
    %c0_i32_0 = arith.constant 0 : i32
    %c0_i32_1 = arith.constant 0 : i32
    return %c0_i32, %c0_i32_0 : i32, i32
  }
  func.func @transform_2(%arg0: i32) -> (i32, i32) {
    %c0_i32 = arith.constant 0 : i32
    %c0_i32_0 = arith.constant 0 : i32
    %c0_i32_1 = arith.constant 0 : i32
    return %c0_i32, %c0_i32_0 : i32, i32
  }
  func.func @transform_3(%arg0: i32) -> (i32, i32) {
    %c0_i32 = arith.constant 0 : i32
    %c0_i32_0 = arith.constant 0 : i32
    %c0_i32_1 = arith.constant 0 : i32
    return %c0_i32, %c0_i32_0 : i32, i32
  }
  func.func @transform_4(%arg0: i32) -> (i32, i32) {
    %c0_i32 = arith.constant 0 : i32
    %c0_i32_0 = arith.constant 0 : i32
    %c0_i32_1 = arith.constant 0 : i32
    return %c0_i32, %c0_i32_0 : i32, i32
  }
  func.func @transform_5(%arg0: i32) -> (i32, i32) {
    %c0_i32 = arith.constant 0 : i32
    %c0_i32_0 = arith.constant 0 : i32
    %c0_i32_1 = arith.constant 0 : i32
    return %c0_i32, %c0_i32_0 : i32, i32
  }
  func.func @transform_6(%arg0: i32) -> (i32, i32) {
    %c0_i32 = arith.constant 0 : i32
    %c0_i32_0 = arith.constant 0 : i32
    %c0_i32_1 = arith.constant 0 : i32
    return %c0_i32, %c0_i32_0 : i32, i32
  }
  func.func @transform_7(%arg0: i32) -> (i32, i32) {
    %c0_i32 = arith.constant 0 : i32
    %c0_i32_0 = arith.constant 0 : i32
    return %arg0, %c0_i32 : i32, i32
  }
}

</mosaic_0001>

<bundles_post_ra>
// kernel: tpu_custom_call.1
= control target key start
LH: loop header
LB: loop body
LE: loop exit
PB: predicated region body
PF: predicated region fallthrough
CT: control target
= control target key end

     0   :  { %12 = vsyncpa [#allocation3], 0  ;;  %s2937_s0 = inlined_call_operand.hbm [shape: bf16[2,784], index: 0, kind: input, shape index: {}]   ;;  %s2938_s1 = inlined_call_operand.hbm [shape: bf16[784,384], index: 1, kind: input, shape index: {}]   ;;  %s2939_s2 = inlined_call_operand.hbm [shape: f32[1,384], index: 2, kind: input, shape index: {}]   ;;  %s2940_s3 = inlined_call_operand.hbm [shape: bf16[384,128], index: 3, kind: input, shape index: {}]   ;;  %s2941_s4 = inlined_call_operand.vmem [shape: f32[1,128], index: 4, kind: input, shape index: {}]   ;;  %s2942_s5 = inlined_call_operand.hbm [shape: bf16[128,128], index: 5, kind: input, shape index: {}]   ;;  %s2943_s6 = inlined_call_operand.vmem [shape: f32[1,128], index: 6, kind: input, shape index: {}]   ;;  %s2944_s7 = inlined_call_operand.hbm [shape: f32[2,128], index: 7, kind: output, shape index: {}]  }
   0x1   :  { %13 = vsyncpa [#allocation6], 0 }
   0x2   :  { %14 = vsyncpa [#allocation9], 0 }
   0x3   :  { %15 = vsyncpa [#allocation4], 0  ;;  %s33_s26 = sshll.u32 %s2938_s1, 4  ;;  %s34_s26 = int_to_ptr.hbm [resolvable:$true] %s33_s26 }
   0x4   :  { %19 = vsyncadd [#allocation3], 336  ;;  %s2816_s27 = smov [#allocation5]   ;;  %s57_s8 = sshll.u32 %s2940_s3, 4  ;;  %s58_s8 = int_to_ptr.hbm [resolvable:$true] %s57_s8 }
   0x5   :  { %s35_s28 = sshll.u32 %s2816_s27, 4  ;;  %s2817_s9 = smov 192   ;;  %s36_s28 = int_to_ptr.vmem [resolvable:$true] %s35_s28 }
   0x6   :  { %s2818_s10 = smov 12   ;;  %s2819_s11 = smov [#allocation8]  }
   0x7   :  { %41 = dma.hbm_to_vmem [thread:$0]  %s34_s26, 18816, %s36_s28, [#allocation6], %s2817_s9, %s2817_s9, %s2818_s10  }
   0x8   :  { %s59_s12 = sshll.u32 %s2819_s11, 4  ;;  %s2820_s13 = smov 64   ;;  %s60_s12 = int_to_ptr.vmem [resolvable:$true] %s59_s12 }
   0x9   :  { %s2821_s14 = smov 4   ;;  %s20_s16 = sshll.u32 %s2937_s0, 4  ;;  %s21_s16 = int_to_ptr.hbm [resolvable:$true] %s20_s16 }
   0xa   :  { %65 = dma.hbm_to_vmem [thread:$0]  %s58_s8, 3072, %s60_s12, [#allocation9], %s2820_s13, %s2820_s13, %s2821_s14  }
   0xb   :  { %s2822_s17 = smov [#allocation2]   ;;  %s47_s20 = sshll.u32 %s2939_s2, 4  ;;  %s48_s20 = int_to_ptr.hbm [resolvable:$true] %s47_s20 }
   0xc   :  { %s22_s18 = sshll.u32 %s2822_s17, 4  ;;  %s2823_s21 = smov 112   ;;  %s23_s18 = int_to_ptr.vmem [resolvable:$true] %s22_s18 }
   0xd   :  { %s2824_s22 = smov 7   ;;  %s2825_s23 = smov [#allocation7]  }
   0xe   :  { %28 = dma.hbm_to_vmem [thread:$0]  %s21_s16, 112, %s23_s18, [#allocation3], %s2823_s21, %s2823_s21, %s2824_s22  }
   0xf   :  { %s49_s24 = sshll.u32 %s2825_s23, 4  ;;  %s72_s27 = sshll.u32 %s2942_s5, 4  ;;  %s50_s24 = int_to_ptr.vmem [resolvable:$true] %s49_s24  ;;  %s73_s27 = int_to_ptr.hbm [resolvable:$true] %s72_s27 }
  0x10   :  { %52 = dma.hbm_to_vmem [thread:$0]  %s48_s20, 48, %s50_s24, [#allocation6]  }
  0x11   :  { %s2826_s0 = smov [#allocation10]  }
  0x12   :  { %s74_s28 = sshll.u32 %s2826_s0, 4  ;;  %s75_s28 = int_to_ptr.vmem [resolvable:$true] %s74_s28 }
  0x13   :  { %80 = dma.hbm_to_vmem [thread:$0]  %s73_s27, 1024, %s75_s28, [#allocation9], %s2820_s13, %s2820_s13, %s2821_s14  }
  0x14   :  { %2808 = dma.done.wait [#allocation3], 448  }
  0x15   :  { %2809 = vsyncadd [#allocation3], 4294966848 }
  0x16   :  { %2810 = dma.done.wait [#allocation6], 18864  }
  0x17   :  { %2811 = vsyncadd [#allocation6], 4294948432 }
  0x18   :  { %2812 = dma.done.wait [#allocation9], 4096  }
  0x19   :  { %2813 = vsyncadd [#allocation9], 4294963200  ;;  %v1828_v0 = vld [vmem:[#allocation5 + $0xa8] sm:$0xf]  ;;  %v2483_v1 = vld [vmem:[#allocation5 + $0xb0] sm:$0xf0] }
  0x1a   :  { %v1924_v2 = vld [vmem:[#allocation5 + $0x168] sm:$0xf]  ;;  %v1829_v3 = vor.u32 %v2483_v1, %v1828_v0  ;;  %v2507_v4 = vld [vmem:[#allocation5 + $0x170] sm:$0xf0]  ;;  %v1816_v9 = vld [vmem:[#allocation5 + $0x90] sm:$0xf] }
  0x1b   :  { %v2116_v5 = vld [vmem:[#allocation5 + $0x2e8] sm:$0xf]  ;;  %v2555_v6 = vld [vmem:[#allocation5 + $0x2f0] sm:$0xf0]  ;;  %v1925_v7 = vor.u32 %v2507_v4, %v1924_v2  ;;  %v2480_v10 = vld [vmem:[#allocation5 + $0x98] sm:$0xf0] }
  0x1c   :  { %v2117_v8 = vor.u32 %v2555_v6, %v2116_v5  ;;  %v1912_v11 = vld [vmem:[#allocation5 + $0x150] sm:$0xf]  ;;  %1123 = vmatpush.bf16.msra.mxu0 %v1829_v3  ;;  %v1817_v12 = vor.u32 %v2480_v10, %v1816_v9  ;;  %v2504_v13 = vld [vmem:[#allocation5 + $0x158] sm:$0xf0]  ;;  %v2020_v18 = vld [vmem:[#allocation5 + $0x228] sm:$0xf] }
  0x1d   :  { %v2104_v14 = vld [vmem:[#allocation5 + $0x2d0] sm:$0xf]  ;;  %v2552_v15 = vld [vmem:[#allocation5 + $0x2d8] sm:$0xf0]  ;;  %1136 = vmatpush.bf16.msra.mxu1 %v1925_v7  ;;  %v1913_v16 = vor.u32 %v2504_v13, %v1912_v11  ;;  %v2531_v19 = vld [vmem:[#allocation5 + $0x230] sm:$0xf0] }
  0x1e   :  { %1162 = vmatpush.bf16.msra.mxu3 %v2117_v8  ;;  %v2105_v17 = vor.u32 %v2552_v15, %v2104_v14  ;;  %v1804_v20 = vld [vmem:[#allocation5 + $0x78] sm:$0xf]  ;;  %v2021_v21 = vor.u32 %v2531_v19, %v2020_v18  ;;  %v2477_v22 = vld [vmem:[#allocation5 + $0x80] sm:$0xf0]  ;;  %v2008_v27 = vld [vmem:[#allocation5 + $0x210] sm:$0xf] }
  0x1f   :  { %v1900_v23 = vld [vmem:[#allocation5 + $0x138] sm:$0xf]  ;;  %v2501_v24 = vld [vmem:[#allocation5 + $0x140] sm:$0xf0]  ;;  %v1805_v28 = vor.u32 %v2477_v22, %v1804_v20  ;;  %v2528_v29 = vld [vmem:[#allocation5 + $0x218] sm:$0xf0] }
  0x20   :  { %v2092_v25 = vld [vmem:[#allocation5 + $0x2b8] sm:$0xf]  ;;  %v2549_v26 = vld [vmem:[#allocation5 + $0x2c0] sm:$0xf0]  ;;  %1124 = vmatpush.bf16.msra.mxu0 %v1817_v12  ;;  %1149 = vmatpush.bf16.msra.mxu2 %v2021_v21  ;;  %v1792_v30 = vld [vmem:[#allocation5 + $0x60] sm:$0xf]  ;;  %v1901_v32 = vor.u32 %v2501_v24, %v1900_v23  ;;  %v2009_v34 = vor.u32 %v2528_v29, %v2008_v27 }
  0x21   :  { %v2474_v31 = vld [vmem:[#allocation5 + $0x68] sm:$0xf0]  ;;  %1137 = vmatpush.bf16.msra.mxu1 %v1913_v16  ;;  %v2093_v33 = vor.u32 %v2549_v26, %v2092_v25  ;;  %v1888_v35 = vld [vmem:[#allocation5 + $0x120] sm:$0xf]  ;;  %v1996_v39 = vld [vmem:[#allocation5 + $0x1f8] sm:$0xf] }
  0x22   :  { %1163 = vmatpush.bf16.msra.mxu3 %v2105_v17  ;;  %v2498_v36 = vld [vmem:[#allocation5 + $0x128] sm:$0xf0]  ;;  %v2080_v37 = vld [vmem:[#allocation5 + $0x2a0] sm:$0xf]  ;;  %v2525_v40 = vld [vmem:[#allocation5 + $0x200] sm:$0xf0]  ;;  %v1793_v41 = vor.u32 %v2474_v31, %v1792_v30 }
  0x23   :  { %v2546_v38 = vld [vmem:[#allocation5 + $0x2a8] sm:$0xf0]  ;;  %v1997_v42 = vor.u32 %v2525_v40, %v1996_v39  ;;  %v1780_v43 = vld [vmem:[#allocation5 + $0x48] sm:$0xf]  ;;  %v2471_v44 = vld [vmem:[#allocation5 + $0x50] sm:$0xf0]  ;;  %v1889_v45 = vor.u32 %v2498_v36, %v1888_v35 }
  0x24   :  { %1125 = vmatpush.bf16.msra.mxu0 %v1805_v28  ;;  %1150 = vmatpush.bf16.msra.mxu2 %v2009_v34  ;;  %v2081_v46 = vor.u32 %v2546_v38, %v2080_v37  ;;  %v1876_v47 = vld [vmem:[#allocation5 + $0x108] sm:$0xf]  ;;  %v1984_v48 = vld [vmem:[#allocation5 + $0x1e0] sm:$0xf]  ;;  %v2522_v49 = vld [vmem:[#allocation5 + $0x1e8] sm:$0xf0]  ;;  %v1781_v53 = vor.u32 %v2471_v44, %v1780_v43 }
  0x25   :  { %1138 = vmatpush.bf16.msra.mxu1 %v1901_v32  ;;  %v2495_v50 = vld [vmem:[#allocation5 + $0x110] sm:$0xf0]  ;;  %v2068_v51 = vld [vmem:[#allocation5 + $0x288] sm:$0xf]  ;;  %v1985_v54 = vor.u32 %v2522_v49, %v1984_v48  ;;  %v1768_v55 = vld [vmem:[#allocation5 + $0x30] sm:$0xf] }
  0x26   :  { %1164 = vmatpush.bf16.msra.mxu3 %v2093_v33  ;;  %v2543_v52 = vld [vmem:[#allocation5 + $0x290] sm:$0xf0]  ;;  %v2468_v56 = vld [vmem:[#allocation5 + $0x38] sm:$0xf0]  ;;  %v1877_v57 = vor.u32 %v2495_v50, %v1876_v47  ;;  %v1864_v59 = vld [vmem:[#allocation5 + $0xf0] sm:$0xf] }
  0x27   :  { %v2069_v58 = vor.u32 %v2543_v52, %v2068_v51  ;;  %v1972_v60 = vld [vmem:[#allocation5 + $0x1c8] sm:$0xf]  ;;  %v2519_v61 = vld [vmem:[#allocation5 + $0x1d0] sm:$0xf0]  ;;  %v2492_v62 = vld [vmem:[#allocation5 + $0xf8] sm:$0xf0]  ;;  %v1769_v1 = vor.u32 %v2468_v56, %v1768_v55 }
  0x28   :  { %1126 = vmatpush.bf16.msra.mxu0 %v1793_v41  ;;  %1151 = vmatpush.bf16.msra.mxu2 %v1997_v42  ;;  %v2056_v63 = vld [vmem:[#allocation5 + $0x270] sm:$0xf]  ;;  %v2540_v0 = vld [vmem:[#allocation5 + $0x278] sm:$0xf0]  ;;  %v1973_v2 = vor.u32 %v2519_v61, %v1972_v60  ;;  %v1756_v3 = vld [vmem:[#allocation5 + $0x18] sm:$0xf]  ;;  %v1865_v5 = vor.u32 %v2492_v62, %v1864_v59 }
  0x29   :  { %1139 = vmatpush.bf16.msra.mxu1 %v1889_v45  ;;  %v2465_v4 = vld [vmem:[#allocation5 + $0x20] sm:$0xf0]  ;;  %v2057_v6 = vor.u32 %v2540_v0, %v2056_v63  ;;  %v1852_v7 = vld [vmem:[#allocation5 + $0xd8] sm:$0xf]  ;;  %v1960_v8 = vld [vmem:[#allocation5 + $0x1b0] sm:$0xf] }
  0x2a   :  { %1165 = vmatpush.bf16.msra.mxu3 %v2081_v46  ;;  %v2516_v9 = vld [vmem:[#allocation5 + $0x1b8] sm:$0xf0]  ;;  %v2489_v10 = vld [vmem:[#allocation5 + $0xe0] sm:$0xf0]  ;;  %v2044_v11 = vld [vmem:[#allocation5 + $0x258] sm:$0xf]  ;;  %v1757_v15 = vor.u32 %v2465_v4, %v1756_v3 }
  0x2b   :  { %v2537_v12 = vld [vmem:[#allocation5 + $0x260] sm:$0xf0]  ;;  %v1744_v13 = vld [vmem:[#allocation5] sm:$0xf]  ;;  %v2462_v14 = vld [vmem:[#allocation5 + $0x8] sm:$0xf0]  ;;  %v1961_v16 = vor.u32 %v2516_v9, %v1960_v8  ;;  %v1853_v23 = vor.u32 %v2489_v10, %v1852_v7 }
  0x2c   :  { %1127 = vmatpush.bf16.msra.mxu0 %v1781_v53  ;;  %1152 = vmatpush.bf16.msra.mxu2 %v1985_v54  ;;  %v1840_v17 = vld [vmem:[#allocation5 + $0xc0] sm:$0xf]  ;;  %v2486_v18 = vld [vmem:[#allocation5 + $0xc8] sm:$0xf0]  ;;  %v1948_v21 = vld [vmem:[#allocation5 + $0x198] sm:$0xf]  ;;  %v2045_v24 = vor.u32 %v2537_v12, %v2044_v11  ;;  %v1745_v35 = vor.u32 %v2462_v14, %v1744_v13 }
  0x2d   :  { %1140 = vmatpush.bf16.msra.mxu1 %v1877_v57  ;;  %v2032_v19 = vld [vmem:[#allocation5 + $0x240] sm:$0xf]  ;;  %v2534_v20 = vld [vmem:[#allocation5 + $0x248] sm:$0xf0]  ;;  %v2513_v22 = vld [vmem:[#allocation5 + $0x1a0] sm:$0xf0]  ;;  %v1841_v39 = vor.u32 %v2486_v18, %v1840_v17 }
  0x2e   :  { %1166 = vmatpush.bf16.msra.mxu3 %v2069_v58  ;;  %v2212_v25 = vld [vmem:[#allocation5 + $0x3a8] sm:$0xf]  ;;  %v2579_v26 = vld [vmem:[#allocation5 + $0x3b0] sm:$0xf0]  ;;  %v2482_v29 = vld [vmem:[#allocation5 + $0xac] sm:$0xf]  ;;  %v1949_v36 = vor.u32 %v2513_v22, %v1948_v21  ;;  %v2033_v40 = vor.u32 %v2534_v20, %v2032_v19 }
  0x2f   :  { %v2308_v27 = vld [vmem:[#allocation5 + $0x468] sm:$0xf]  ;;  %v2603_v28 = vld [vmem:[#allocation5 + $0x470] sm:$0xf0]  ;;  %v1830_v30 = vld [vmem:[#allocation5 + $0xb4] sm:$0xf0]  ;;  %v2213_v43 = vor.u32 %v2579_v26, %v2212_v25 }
  0x30   :  { %1128 = vmatpush.bf16.msra.mxu0 %v1769_v1  ;;  %1153 = vmatpush.bf16.msra.mxu2 %v1973_v2  ;;  %v1936_v31 = vld [vmem:[#allocation5 + $0x180] sm:$0xf]  ;;  %v104_v32 = vld [vmem:[#allocation2] sm:$0x7f]  ;;  %v105_v33 = vld [vmem:[#allocation2 + $0x7] sm:$0x7f]  ;;  %v2309_v44 = vor.u32 %v2603_v28, %v2308_v27  ;;  %v1833_v47 = vor.u32 %v2482_v29, %v1830_v30 }
  0x31   :  { %1141 = vmatpush.bf16.msra.mxu1 %v1865_v5  ;;  %v106_v34 = vld [vmem:[#allocation2 + $0xe] sm:$0x7f]  ;;  %v2510_v37 = vld [vmem:[#allocation5 + $0x188] sm:$0xf0]  ;;  %v107_v38 = vld [vmem:[#allocation2 + $0x15] sm:$0x7f] }
  0x32   :  { %1167 = vmatpush.bf16.msra.mxu3 %v2057_v6  ;;  %313 = vst [vmem:[#allocation1] ss:$9 sm:$0xff] %v104_v32  ;;  %v2200_v41 = vld [vmem:[#allocation5 + $0x390] sm:$0xf]  ;;  %v2576_v42 = vld [vmem:[#allocation5 + $0x398] sm:$0xf0]  ;;  %v1937_v50 = vor.u32 %v2510_v37, %v1936_v31 }
  0x33   :  { %316 = vst [vmem:[#allocation1 + $0x1] ss:$9 sm:$0xff] %v105_v33  ;;  %v2320_v45 = vld [vmem:[#allocation5 + $0x480] sm:$0xf]  ;;  %v2606_v46 = vld [vmem:[#allocation5 + $0x488] sm:$0xf0]  ;;  %v2201_v56 = vor.u32 %v2576_v42, %v2200_v41 }
  0x34   :  { %1129 = vmatpush.bf16.msra.mxu0 %v1757_v15  ;;  %1154 = vmatpush.bf16.msra.mxu2 %v1961_v16  ;;  %319 = vst [vmem:[#allocation1 + $0x2] ss:$9 sm:$0xff] %v106_v34  ;;  %v2296_v48 = vld [vmem:[#allocation5 + $0x450] sm:$0xf]  ;;  %v2600_v49 = vld [vmem:[#allocation5 + $0x458] sm:$0xf0]  ;;  %v2321_v53 = vor.u32 %v2606_v46, %v2320_v45 }
  0x35   :  { %1142 = vmatpush.bf16.msra.mxu1 %v1853_v23  ;;  %322 = vst [vmem:[#allocation1 + $0x3] ss:$9 sm:$0xff] %v107_v38  ;;  %v2479_v51 = vld [vmem:[#allocation5 + $0x94] sm:$0xf]  ;;  %v1818_v52 = vld [vmem:[#allocation5 + $0x9c] sm:$0xf0]  ;;  %v2297_v57 = vor.u32 %v2600_v49, %v2296_v48 }
  0x36   :  { %1168 = vmatpush.bf16.msra.mxu3 %v2045_v24  ;;  %v2506_v54 = vld [vmem:[#allocation5 + $0x16c] sm:$0xf]  ;;  %v1926_v55 = vld [vmem:[#allocation5 + $0x174] sm:$0xf0]  ;;  %v1821_v59 = vor.u32 %v2479_v51, %v1818_v52  ;;  %v2573_v60 = vld [vmem:[#allocation5 + $0x380] sm:$0xf0] }
  0x37   :  { %v2188_v58 = vld [vmem:[#allocation5 + $0x378] sm:$0xf]  ;;  %v2597_v62 = vld [vmem:[#allocation5 + $0x440] sm:$0xf0]  ;;  %v2476_v63 = vld [vmem:[#allocation5 + $0x7c] sm:$0xf]  ;;  %v1929_v1 = vor.u32 %v2506_v54, %v1926_v55 }
  0x38   :  { %1130 = vmatpush.bf16.msra.mxu0 %v1745_v35  ;;  %1155 = vmatpush.bf16.msra.mxu2 %v1949_v36  ;;  %v2284_v61 = vld [vmem:[#allocation5 + $0x438] sm:$0xf]  ;;  %v1806_v0 = vld [vmem:[#allocation5 + $0x84] sm:$0xf0]  ;;  %v2176_v2 = vld [vmem:[#allocation5 + $0x360] sm:$0xf]  ;;  %v2189_v6 = vor.u32 %v2573_v60, %v2188_v58 }
  0x39   :  { %1143 = vmatpush.bf16.msra.mxu1 %v1841_v39  ;;  %v2503_v3 = vld [vmem:[#allocation5 + $0x154] sm:$0xf]  ;;  %v1914_v4 = vld [vmem:[#allocation5 + $0x15c] sm:$0xf0]  ;;  %v2285_v7 = vor.u32 %v2597_v62, %v2284_v61  ;;  %v1809_v10 = vor.u32 %v2476_v63, %v1806_v0  ;;  %v2570_v11 = vld [vmem:[#allocation5 + $0x368] sm:$0xf0] }
  0x3a   :  { %1169 = vmatpush.bf16.msra.mxu3 %v2033_v40  ;;  %v2272_v12 = vld [vmem:[#allocation5 + $0x420] sm:$0xf]  ;;  %v2594_v13 = vld [vmem:[#allocation5 + $0x428] sm:$0xf0]  ;;  %v2473_v14 = vld [vmem:[#allocation5 + $0x64] sm:$0xf]  ;;  %v1917_v16 = vor.u32 %v2503_v3, %v1914_v4  ;;  %v2177_v20 = vor.u32 %v2570_v11, %v2176_v2 }
  0x3b   :  { %v1794_v15 = vld [vmem:[#allocation5 + $0x6c] sm:$0xf0]  ;;  %v2500_v17 = vld [vmem:[#allocation5 + $0x13c] sm:$0xf]  ;;  %v1902_v18 = vld [vmem:[#allocation5 + $0x144] sm:$0xf0]  ;;  %v2273_v21 = vor.u32 %v2594_v13, %v2272_v12 }
  0x3c   :  { %1175 = vmatpush.bf16.msrb.mxu0 %v2213_v43  ;;  %1156 = vmatpush.bf16.msra.mxu2 %v1937_v50  ;;  %v2885_v5 = vld [vmem:[#allocation1 + $0x12] sm:$0xff]  ;;  %v2887_v8 = vld [vmem:[#allocation1] sm:$0xff]  ;;  %v2889_v9 = vld [vmem:[#allocation1 + $0x9] sm:$0xff]  ;;  %v1797_v23 = vor.u32 %v2473_v14, %v1794_v15  ;;  %v1905_v29 = vor.u32 %v2500_v17, %v1902_v18  ;;  %vm1120_vm0 = vcmask 130048  }
  0x3d   :  { %1188 = vmatpush.bf16.msrb.mxu1 %v2309_v44  ;;  %1131 = vmatmul.bf16.vlgmr.msra.gmra.mxu0 %v2887_v8  ;;  %v2894_v19 = vld [vmem:[#allocation1 + $0x1b] sm:$0xff]  ;;  %v2164_v22 = vld [vmem:[#allocation5 + $0x348] sm:$0xf]  ;;  %v2470_v27 = vld [vmem:[#allocation5 + $0x4c] sm:$0xf] }
  0x3e   :  { %1214 = vmatpush.bf16.msrb.mxu3 %v1833_v47  ;;  %1144 = vmatmul.bf16.vlgmr.msra.gmra.mxu1 %v2889_v9  ;;  %v2567_v24 = vld [vmem:[#allocation5 + $0x350] sm:$0xf0]  ;;  %v2260_v25 = vld [vmem:[#allocation5 + $0x408] sm:$0xf]  ;;  %v1782_v28 = vld [vmem:[#allocation5 + $0x54] sm:$0xf0] }
  0x3f   :  { %1157 = vmatmul.bf16.vlgmr.msra.gmra.mxu2 %v2885_v5  ;;  %v2591_v26 = vld [vmem:[#allocation5 + $0x410] sm:$0xf0]  ;;  %1170 = vmatmul.bf16.vlgmr.msra.gmra.mxu3 %v2894_v19  ;;  %v2497_v30 = vld [vmem:[#allocation5 + $0x124] sm:$0xf]  ;;  %v1890_v31 = vld [vmem:[#allocation5 + $0x12c] sm:$0xf0]  ;;  %v2165_v32 = vor.u32 %v2567_v24, %v2164_v22  ;;  %v1785_v35 = vor.u32 %v2470_v27, %v1782_v28 }
  0x40   :  { %1208 = vmatpush.bf16.msrb.mxu2 %v2321_v53  ;;  %1176 = vmatpush.bf16.msrb.mxu0 %v2201_v56  ;;  %v2261_v33 = vor.u32 %v2591_v26, %v2260_v25  ;;  %v2152_v34 = vld [vmem:[#allocation5 + $0x330] sm:$0xf]  ;;  %v2564_v36 = vld [vmem:[#allocation5 + $0x338] sm:$0xf0]  ;;  %v2467_v39 = vld [vmem:[#allocation5 + $0x34] sm:$0xf]  ;;  %v1893_v41 = vor.u32 %v2497_v30, %v1890_v31 }
  0x41   :  { %1189 = vmatpush.bf16.msrb.mxu1 %v2297_v57  ;;  %v2248_v37 = vld [vmem:[#allocation5 + $0x3f0] sm:$0xf]  ;;  %v2588_v38 = vld [vmem:[#allocation5 + $0x3f8] sm:$0xf0]  ;;  %v1770_v40 = vld [vmem:[#allocation5 + $0x3c] sm:$0xf0]  ;;  %v2153_v44 = vor.u32 %v2564_v36, %v2152_v34 }
  0x42   :  { %1215 = vmatpush.bf16.msrb.mxu3 %v1821_v59  ;;  %v2494_v42 = vld [vmem:[#allocation5 + $0x10c] sm:$0xf]  ;;  %v1878_v43 = vld [vmem:[#allocation5 + $0x114] sm:$0xf0]  ;;  %v2249_v45 = vor.u32 %v2588_v38, %v2248_v37  ;;  %v1773_v47 = vor.u32 %v2467_v39, %v1770_v40  ;;  %v2561_v48 = vld [vmem:[#allocation5 + $0x320] sm:$0xf0] }
  0x43   :  { %v2140_v46 = vld [vmem:[#allocation5 + $0x318] sm:$0xf]  ;;  %v2585_v50 = vld [vmem:[#allocation5 + $0x3e0] sm:$0xf0]  ;;  %v2464_v51 = vld [vmem:[#allocation5 + $0x1c] sm:$0xf]  ;;  %v1881_v53 = vor.u32 %v2494_v42, %v1878_v43 }
  0x44   :  { %1227 = vmatpush.bf16.msra.mxu2 %v1929_v1  ;;  %1177 = vmatpush.bf16.msrb.mxu0 %v2189_v6  ;;  %v2236_v49 = vld [vmem:[#allocation5 + $0x3d8] sm:$0xf]  ;;  %v1758_v52 = vld [vmem:[#allocation5 + $0x24] sm:$0xf0]  ;;  %v2491_v55 = vld [vmem:[#allocation5 + $0xf4] sm:$0xf]  ;;  %v2141_v57 = vor.u32 %v2561_v48, %v2140_v46 }
  0x45   :  { %1190 = vmatpush.bf16.msrb.mxu1 %v2285_v7  ;;  %v2897_v54 = vld [vmem:[#allocation1 + $0x36] sm:$0xff]  ;;  %v1866_v56 = vld [vmem:[#allocation5 + $0xfc] sm:$0xf0]  ;;  %v2237_v58 = vor.u32 %v2585_v50, %v2236_v49  ;;  %v2558_v60 = vld [vmem:[#allocation5 + $0x308] sm:$0xf0]  ;;  %v1761_v62 = vor.u32 %v2464_v51, %v1758_v52 }
  0x46   :  { %1216 = vmatpush.bf16.msrb.mxu3 %v1809_v10  ;;  %v2128_v59 = vld [vmem:[#allocation5 + $0x300] sm:$0xf]  ;;  %v2582_v63 = vld [vmem:[#allocation5 + $0x3c8] sm:$0xf0]  ;;  %v2461_v0 = vld [vmem:[#allocation5 + $0x4] sm:$0xf]  ;;  %v1869_v2 = vor.u32 %v2491_v55, %v1866_v56 }
  0x47   :  { %v2224_v61 = vld [vmem:[#allocation5 + $0x3c0] sm:$0xf]  ;;  %v1746_v1 = vld [vmem:[#allocation5 + $0xc] sm:$0xf0]  ;;  %v2530_v3 = vld [vmem:[#allocation5 + $0x22c] sm:$0xf]  ;;  %v2129_v12 = vor.u32 %v2558_v60, %v2128_v59 }
  0x48   :  { %1228 = vmatpush.bf16.msra.mxu2 %v1917_v16  ;;  %1178 = vmatpush.bf16.msrb.mxu0 %v2177_v20  ;;  %v2022_v4 = vld [vmem:[#allocation5 + $0x234] sm:$0xf0]  ;;  %v2554_v6 = vld [vmem:[#allocation5 + $0x2ec] sm:$0xf]  ;;  %v2225_v13 = vor.u32 %v2582_v63, %v2224_v61  ;;  %v2488_v14 = vld [vmem:[#allocation5 + $0xdc] sm:$0xf]  ;;  %v1749_v16 = vor.u32 %v2461_v0, %v1746_v1 }
  0x49   :  { %1191 = vmatpush.bf16.msrb.mxu1 %v2273_v21  ;;  %v2118_v7 = vld [vmem:[#allocation5 + $0x2f4] sm:$0xf0]  ;;  %v2578_v10 = vld [vmem:[#allocation5 + $0x3ac] sm:$0xf]  ;;  %v1854_v15 = vld [vmem:[#allocation5 + $0xe4] sm:$0xf0]  ;;  %v2025_v17 = vor.u32 %v2530_v3, %v2022_v4 }
  0x4a   :  { %1217 = vmatpush.bf16.msrb.mxu3 %v1797_v23  ;;  %v2214_v11 = vld [vmem:[#allocation5 + $0x3b4] sm:$0xf0]  ;;  %v2121_v18 = vor.u32 %v2554_v6, %v2118_v7  ;;  %v2527_v21 = vld [vmem:[#allocation5 + $0x214] sm:$0xf]  ;;  %v2010_v22 = vld [vmem:[#allocation5 + $0x21c] sm:$0xf0]  ;;  %v1857_v24 = vor.u32 %v2488_v14, %v1854_v15 }
  0x4b   :  { %v2217_v20 = vor.u32 %v2578_v10, %v2214_v11  ;;  %v2551_v23 = vld [vmem:[#allocation5 + $0x2d4] sm:$0xf]  ;;  %v2106_v25 = vld [vmem:[#allocation5 + $0x2dc] sm:$0xf0]  ;;  %v1842_v30 = vld [vmem:[#allocation5 + $0xcc] sm:$0xf0] }
  0x4c   :  { %1229 = vmatpush.bf16.msra.mxu2 %v1905_v29  ;;  %1179 = vmatpush.bf16.msrb.mxu0 %v2165_v32  ;;  %v2575_v26 = vld [vmem:[#allocation5 + $0x394] sm:$0xf]  ;;  %v2202_v27 = vld [vmem:[#allocation5 + $0x39c] sm:$0xf0]  ;;  %v2485_v29 = vld [vmem:[#allocation5 + $0xc4] sm:$0xf]  ;;  %v2013_v32 = vor.u32 %v2527_v21, %v2010_v22 }
  0x4d   :  { %1192 = vmatpush.bf16.msrb.mxu1 %v2261_v33  ;;  %v2901_v28 = vld [vmem:[#allocation1 + $0x24] sm:$0xff]  ;;  %v2903_v31 = vld [vmem:[#allocation1 + $0x2d] sm:$0xff]  ;;  %v2310_v34 = vld [vmem:[#allocation5 + $0x474] sm:$0xf0]  ;;  %v2205_v36 = vor.u32 %v2575_v26, %v2202_v27  ;;  %v1845_v40 = vor.u32 %v2485_v29, %v1842_v30 }
  0x4e   :  { %1218 = vmatpush.bf16.msrb.mxu3 %v1785_v35  ;;  %v2602_v33 = vld [vmem:[#allocation5 + $0x46c] sm:$0xf]  ;;  %v2109_v35 = vor.u32 %v2551_v23, %v2106_v25  ;;  %v2524_v37 = vld [vmem:[#allocation5 + $0x1fc] sm:$0xf]  ;;  %v1998_v38 = vld [vmem:[#allocation5 + $0x204] sm:$0xf0] }
  0x4f   :  { %2330 = vmatmul.msk.bf16.vlgmr.msrb.gmra.mxu2 %vm1120_vm0, %v2897_v54  ;;  %v2548_v39 = vld [vmem:[#allocation5 + $0x2bc] sm:$0xf]  ;;  %v2190_v43 = vld [vmem:[#allocation5 + $0x384] sm:$0xf0]  ;;  %v2599_v46 = vld [vmem:[#allocation5 + $0x454] sm:$0xf] }
  0x50   :  { %1230 = vmatpush.bf16.msra.mxu2 %v1893_v41  ;;  %1180 = vmatpush.bf16.msrb.mxu0 %v2153_v44  ;;  %v2094_v41 = vld [vmem:[#allocation5 + $0x2c4] sm:$0xf0]  ;;  %v2572_v42 = vld [vmem:[#allocation5 + $0x37c] sm:$0xf]  ;;  %v2313_v44 = vor.u32 %v2602_v33, %v2310_v34  ;;  %v2521_v50 = vld [vmem:[#allocation5 + $0x1e4] sm:$0xf] }
  0x51   :  { %1193 = vmatpush.bf16.msrb.mxu1 %v2249_v45  ;;  %v2001_v45 = vor.u32 %v2524_v37, %v1998_v38  ;;  %v2097_v48 = vor.u32 %v2548_v39, %v2094_v41  ;;  %v2193_v49 = vor.u32 %v2572_v42, %v2190_v43  ;;  %v1986_v51 = vld [vmem:[#allocation5 + $0x1ec] sm:$0xf0]  ;;  %v2545_v52 = vld [vmem:[#allocation5 + $0x2a4] sm:$0xf]  ;;  %v2596_v59 = vld [vmem:[#allocation5 + $0x43c] sm:$0xf] }
  0x52   :  { %1219 = vmatpush.bf16.msrb.mxu3 %v1773_v47  ;;  %v2298_v47 = vld [vmem:[#allocation5 + $0x45c] sm:$0xf0]  ;;  %v2569_v55 = vld [vmem:[#allocation5 + $0x364] sm:$0xf]  ;;  %v2178_v56 = vld [vmem:[#allocation5 + $0x36c] sm:$0xf0] }
  0x53   :  { %v2286_v60 = vld [vmem:[#allocation5 + $0x444] sm:$0xf0]  ;;  %v2518_v63 = vld [vmem:[#allocation5 + $0x1cc] sm:$0xf]  ;;  %v1974_v0 = vld [vmem:[#allocation5 + $0x1d4] sm:$0xf0] }
  0x54   :  { %1231 = vmatpush.bf16.msra.mxu2 %v1881_v53  ;;  %1181 = vmatpush.bf16.msrb.mxu0 %v2141_v57  ;;  %v2082_v53 = vld [vmem:[#allocation5 + $0x2ac] sm:$0xf0]  ;;  %v2301_v57 = vor.u32 %v2599_v46, %v2298_v47  ;;  %v2542_v1 = vld [vmem:[#allocation5 + $0x28c] sm:$0xf]  ;;  %v2166_v4 = vld [vmem:[#allocation5 + $0x354] sm:$0xf0]  ;;  %v2289_v6 = vor.u32 %v2596_v59, %v2286_v60  ;;  %v1977_v7 = vor.u32 %v2518_v63, %v1974_v0 }
  0x55   :  { %1194 = vmatpush.bf16.msrb.mxu1 %v2237_v58  ;;  %v1989_v58 = vor.u32 %v2521_v50, %v1986_v51  ;;  %v2085_v61 = vor.u32 %v2545_v52, %v2082_v53  ;;  %v2566_v3 = vld [vmem:[#allocation5 + $0x34c] sm:$0xf]  ;;  %v2593_v10 = vld [vmem:[#allocation5 + $0x424] sm:$0xf]  ;;  %v2274_v11 = vld [vmem:[#allocation5 + $0x42c] sm:$0xf0] }
  0x56   :  { %1220 = vmatpush.bf16.msrb.mxu3 %v1761_v62  ;;  %v2181_v62 = vor.u32 %v2569_v55, %v2178_v56  ;;  %v2515_v14 = vld [vmem:[#allocation5 + $0x1b4] sm:$0xf]  ;;  %v1962_v15 = vld [vmem:[#allocation5 + $0x1bc] sm:$0xf0]  ;;  %v2277_v21 = vor.u32 %v2593_v10, %v2274_v11  ;;  %v2590_v23 = vld [vmem:[#allocation5 + $0x40c] sm:$0xf] }
  0x57   :  { %v1965_v22 = vor.u32 %v2515_v14, %v1962_v15  ;;  %v2512_v27 = vld [vmem:[#allocation5 + $0x19c] sm:$0xf]  ;;  %v1950_v29 = vld [vmem:[#allocation5 + $0x1a4] sm:$0xf0]  ;;  %v1938_v38 = vld [vmem:[#allocation5 + $0x18c] sm:$0xf0] }
  0x58   :  { %1232 = vmatpush.bf16.msra.mxu2 %v1869_v2  ;;  %1182 = vmatpush.bf16.msrb.mxu0 %v2129_v12  ;;  %v2070_v2 = vld [vmem:[#allocation5 + $0x294] sm:$0xf0]  ;;  %v2536_v30 = vld [vmem:[#allocation5 + $0x25c] sm:$0xf]  ;;  %v2142_v34 = vld [vmem:[#allocation5 + $0x324] sm:$0xf0]  ;;  %v1953_v37 = vor.u32 %v2512_v27, %v1950_v29 }
  0x59   :  { %1195 = vmatpush.bf16.msrb.mxu1 %v2225_v13  ;;  %v2073_v12 = vor.u32 %v2542_v1, %v2070_v2  ;;  %v2169_v13 = vor.u32 %v2566_v3, %v2166_v4  ;;  %v2560_v33 = vld [vmem:[#allocation5 + $0x31c] sm:$0xf]  ;;  %v2587_v39 = vld [vmem:[#allocation5 + $0x3f4] sm:$0xf]  ;;  %v2533_v43 = vld [vmem:[#allocation5 + $0x244] sm:$0xf] }
  0x5a   :  { %1221 = vmatpush.bf16.msrb.mxu3 %v1749_v16  ;;  %v2539_v16 = vld [vmem:[#allocation5 + $0x274] sm:$0xf]  ;;  %v2145_v42 = vor.u32 %v2560_v33, %v2142_v34  ;;  %v2130_v46 = vld [vmem:[#allocation5 + $0x30c] sm:$0xf0]  ;;  %v2508_v51 = vld [vmem:[#allocation5 + $0x178] sm:$0xf0] }
  0x5b   :  { %1183 = vmatmul.bf16.vlgmr.msrb.gmra.mxu0 %v2901_v28  ;;  %v1836_v47 = vld [vmem:[#allocation5 + $0xb0] sm:$0xf]  ;;  %v2584_v53 = vld [vmem:[#allocation5 + $0x3dc] sm:$0xf]  ;;  %v2238_v55 = vld [vmem:[#allocation5 + $0x3e4] sm:$0xf0] }
  0x5c   :  { %1240 = vmatpush.bf16.msra.mxu0 %v2025_v17  ;;  %1233 = vmatpush.bf16.msra.mxu2 %v1857_v24  ;;  %v2058_v17 = vld [vmem:[#allocation5 + $0x27c] sm:$0xf0]  ;;  %v2262_v24 = vld [vmem:[#allocation5 + $0x414] sm:$0xf0]  ;;  %v1932_v50 = vld [vmem:[#allocation5 + $0x170] sm:$0xf]  ;;  %v2241_v0 = vor.u32 %v2584_v53, %v2238_v55 }
  0x5d   :  { %1253 = vmatpush.bf16.msra.mxu1 %v2121_v18  ;;  %1222 = vmatmul.bf16.vlgmr.msrb.gmra.mxu3 %v2887_v8  ;;  %v2563_v18 = vld [vmem:[#allocation5 + $0x334] sm:$0xf]  ;;  %v2061_v25 = vor.u32 %v2539_v16, %v2058_v17  ;;  %v2481_v59 = vld [vmem:[#allocation5 + $0xa0] sm:$0xf0]  ;;  %v2322_v63 = vld [vmem:[#allocation5 + $0x48c] sm:$0xf0] }
  0x5e   :  { %1266 = vmatpush.bf16.msra.mxu3 %v2217_v20  ;;  %1196 = vmatmul.bf16.vlgmr.msrb.gmra.mxu1 %v2903_v31  ;;  %v2154_v20 = vld [vmem:[#allocation5 + $0x33c] sm:$0xf0]  ;;  %v1920_v1 = vld [vmem:[#allocation5 + $0x158] sm:$0xf]  ;;  %v2505_v2 = vld [vmem:[#allocation5 + $0x160] sm:$0xf0] }
  0x5f   :  { %v2157_v26 = vor.u32 %v2563_v18, %v2154_v20  ;;  %v2581_v3 = vld [vmem:[#allocation5 + $0x3c4] sm:$0xf]  ;;  %v2226_v4 = vld [vmem:[#allocation5 + $0x3cc] sm:$0xf0]  ;;  %v1921_v14 = vor.u32 %v2505_v2, %v1920_v1  ;;  %v1812_v15 = vld [vmem:[#allocation5 + $0x80] sm:$0xf] }
  0x60   :  { %1241 = vmatpush.bf16.msra.mxu0 %v2013_v32  ;;  %1234 = vmatpush.bf16.msra.mxu2 %v1845_v40  ;;  %v2046_v32 = vld [vmem:[#allocation5 + $0x264] sm:$0xf0]  ;;  %v2250_v40 = vld [vmem:[#allocation5 + $0x3fc] sm:$0xf0]  ;;  %v2124_v11 = vld [vmem:[#allocation5 + $0x2f0] sm:$0xf]  ;;  %v2229_v16 = vor.u32 %v2581_v3, %v2226_v4 }
  0x61   :  { %1254 = vmatpush.bf16.msra.mxu1 %v2109_v35  ;;  %v2265_v35 = vor.u32 %v2590_v23, %v2262_v24  ;;  %v2049_v41 = vor.u32 %v2536_v30, %v2046_v32  ;;  %v2478_v17 = vld [vmem:[#allocation5 + $0x88] sm:$0xf0]  ;;  %v1908_v18 = vld [vmem:[#allocation5 + $0x140] sm:$0xf]  ;;  %v2529_v23 = vld [vmem:[#allocation5 + $0x220] sm:$0xf0] }
  0x62   :  { %1267 = vmatpush.bf16.msra.mxu3 %v2205_v36  ;;  %v2509_v36 = vld [vmem:[#allocation5 + $0x184] sm:$0xf]  ;;  %v2502_v20 = vld [vmem:[#allocation5 + $0x148] sm:$0xf0]  ;;  %v1813_v27 = vor.u32 %v2478_v17, %v1812_v15  ;;  %v1800_v30 = vld [vmem:[#allocation5 + $0x68] sm:$0xf] }
  0x63   :  { %1235 = vmatmul.bf16.vlgmr.msra.gmra.mxu2 %v2889_v9  ;;  %v1941_v52 = vor.u32 %v2509_v36, %v1938_v38  ;;  %v1909_v29 = vor.u32 %v2502_v20, %v1908_v18  ;;  %v2475_v32 = vld [vmem:[#allocation5 + $0x70] sm:$0xf0]  ;;  %v1896_v33 = vld [vmem:[#allocation5 + $0x128] sm:$0xf]  ;;  %v2004_v36 = vld [vmem:[#allocation5 + $0x200] sm:$0xf] }
  0x64   :  { %1279 = vmatpush.bf16.msrb.mxu2 %v2313_v44  ;;  %1242 = vmatpush.bf16.msra.mxu0 %v2001_v45  ;;  %v2034_v44 = vld [vmem:[#allocation5 + $0x24c] sm:$0xf0]  ;;  %v2557_v45 = vld [vmem:[#allocation5 + $0x304] sm:$0xf]  ;;  %v2499_v34 = vld [vmem:[#allocation5 + $0x130] sm:$0xf0] }
  0x65   :  { %1255 = vmatpush.bf16.msra.mxu1 %v2097_v48  ;;  %v2484_v48 = vld [vmem:[#allocation5 + $0xb8] sm:$0xf0]  ;;  %v2037_v56 = vor.u32 %v2533_v43, %v2034_v44  ;;  %v1788_v43 = vld [vmem:[#allocation5 + $0x50] sm:$0xf]  ;;  %v1764_v4 = vld [vmem:[#allocation5 + $0x20] sm:$0xf] }
  0x66   :  { %1268 = vmatpush.bf16.msra.mxu3 %v2193_v49  ;;  %v2253_v49 = vor.u32 %v2587_v39, %v2250_v40  ;;  %v1837_v60 = vor.u32 %v2484_v48, %v1836_v47  ;;  %v2100_v39 = vld [vmem:[#allocation5 + $0x2c0] sm:$0xf]  ;;  %v2550_v40 = vld [vmem:[#allocation5 + $0x2c8] sm:$0xf0]  ;;  %v2472_v44 = vld [vmem:[#allocation5 + $0x58] sm:$0xf0] }
  0x67   :  { %v1992_v48 = vld [vmem:[#allocation5 + $0x1e8] sm:$0xf]  ;;  %v1789_v53 = vor.u32 %v2472_v44, %v1788_v43  ;;  %v2544_v1 = vld [vmem:[#allocation5 + $0x298] sm:$0xf0]  ;;  %v2064_v15 = vld [vmem:[#allocation5 + $0x278] sm:$0xf] }
  0x68   :  { %1280 = vmatpush.bf16.msrb.mxu2 %v2301_v57  ;;  %1243 = vmatpush.bf16.msra.mxu0 %v1989_v58  ;;  %v2133_v57 = vor.u32 %v2557_v45, %v2130_v46  ;;  %v1824_v58 = vld [vmem:[#allocation5 + $0x98] sm:$0xf]  ;;  %v1884_v45 = vld [vmem:[#allocation5 + $0x110] sm:$0xf]  ;;  %v2496_v46 = vld [vmem:[#allocation5 + $0x118] sm:$0xf0] }
  0x69   :  { %1256 = vmatpush.bf16.msra.mxu1 %v2085_v61  ;;  %v1933_v61 = vor.u32 %v2508_v51, %v1932_v50  ;;  %v2523_v50 = vld [vmem:[#allocation5 + $0x1f0] sm:$0xf0]  ;;  %v2088_v51 = vld [vmem:[#allocation5 + $0x2a8] sm:$0xf]  ;;  %v1885_v55 = vor.u32 %v2496_v46, %v1884_v45  ;;  %v2601_v43 = vld [vmem:[#allocation5 + $0x460] sm:$0xf0] }
  0x6a   :  { %1269 = vmatpush.bf16.msra.mxu3 %v2181_v62  ;;  %v2605_v62 = vld [vmem:[#allocation5 + $0x484] sm:$0xf]  ;;  %v1752_v20 = vld [vmem:[#allocation5 + $0x8] sm:$0xf] }
  0x6b   :  { %v2325_v10 = vor.u32 %v2605_v62, %v2322_v63  ;;  %v2520_v63 = vld [vmem:[#allocation5 + $0x1d8] sm:$0xf0]  ;;  %v1944_v45 = vld [vmem:[#allocation5 + $0x188] sm:$0xf] }
  0x6c   :  { %1281 = vmatpush.bf16.msrb.mxu2 %v2289_v6  ;;  %1244 = vmatpush.bf16.msra.mxu0 %v1977_v7  ;;  %v2028_v6 = vld [vmem:[#allocation5 + $0x230] sm:$0xf]  ;;  %v2532_v7 = vld [vmem:[#allocation5 + $0x238] sm:$0xf0] }
  0x6d   :  { %1257 = vmatpush.bf16.msra.mxu1 %v2073_v12  ;;  %v2556_v12 = vld [vmem:[#allocation5 + $0x2f8] sm:$0xf0] }
  0x6e   :  { %1270 = vmatpush.bf16.msra.mxu3 %v2169_v13  ;;  %v1825_v13 = vor.u32 %v2481_v59, %v1824_v58  ;;  %v2125_v24 = vor.u32 %v2556_v12, %v2124_v11  ;;  %v1872_v58 = vld [vmem:[#allocation5 + $0xf8] sm:$0xf]  ;;  %v2493_v59 = vld [vmem:[#allocation5 + $0x100] sm:$0xf0] }
  0x6f   :  { %v1873_v3 = vor.u32 %v2493_v59, %v1872_v58  ;;  %v1968_v12 = vld [vmem:[#allocation5 + $0x1b8] sm:$0xf]  ;;  %v2598_v58 = vld [vmem:[#allocation5 + $0x448] sm:$0xf0] }
  0x70   :  { %1282 = vmatpush.bf16.msrb.mxu2 %v2277_v21  ;;  %1245 = vmatpush.bf16.msra.mxu0 %v1965_v22  ;;  %v2029_v21 = vor.u32 %v2532_v7, %v2028_v6  ;;  %v2016_v22 = vld [vmem:[#allocation5 + $0x218] sm:$0xf]  ;;  %v2466_v6 = vld [vmem:[#allocation5 + $0x28] sm:$0xf0]  ;;  %v1860_v7 = vld [vmem:[#allocation5 + $0xe0] sm:$0xf] }
  0x71   :  { %1258 = vmatpush.bf16.msra.mxu1 %v2061_v25  ;;  %v2112_v25 = vld [vmem:[#allocation5 + $0x2d8] sm:$0xf]  ;;  %v1765_v17 = vor.u32 %v2466_v6, %v1764_v4 }
  0x72   :  { %1271 = vmatpush.bf16.msra.mxu3 %v2157_v26  ;;  %v2553_v26 = vld [vmem:[#allocation5 + $0x2e0] sm:$0xf0] }
  0x73   :  { %v2113_v38 = vor.u32 %v2553_v26, %v2112_v25  ;;  %v2580_v25 = vld [vmem:[#allocation5 + $0x3b8] sm:$0xf0]  ;;  %v2316_v26 = vld [vmem:[#allocation5 + $0x470] sm:$0xf] }
  0x74   :  { %1283 = vmatpush.bf16.msrb.mxu2 %v2265_v35  ;;  %1246 = vmatpush.bf16.msra.mxu0 %v1953_v37  ;;  %v2017_v35 = vor.u32 %v2529_v23, %v2016_v22  ;;  %v2526_v37 = vld [vmem:[#allocation5 + $0x208] sm:$0xf0]  ;;  %v1848_v22 = vld [vmem:[#allocation5 + $0xc8] sm:$0xf]  ;;  %v2487_v23 = vld [vmem:[#allocation5 + $0xd0] sm:$0xf0] }
  0x75   :  { %1259 = vmatpush.bf16.msra.mxu1 %v2049_v41  ;;  %v1801_v41 = vor.u32 %v2475_v32, %v1800_v30  ;;  %v2005_v47 = vor.u32 %v2526_v37, %v2004_v36  ;;  %v1956_v30 = vld [vmem:[#allocation5 + $0x1a0] sm:$0xf]  ;;  %v1849_v37 = vor.u32 %v2487_v23, %v1848_v22  ;;  %v2586_v23 = vld [vmem:[#allocation5 + $0x3e8] sm:$0xf0] }
  0x76   :  { %1272 = vmatpush.bf16.msra.mxu3 %v2145_v42  ;;  %v1897_v42 = vor.u32 %v2499_v34, %v1896_v33  ;;  %v2514_v33 = vld [vmem:[#allocation5 + $0x1a8] sm:$0xf0]  ;;  %v2052_v34 = vld [vmem:[#allocation5 + $0x260] sm:$0xf] }
  0x77   :  { %v1957_v44 = vor.u32 %v2514_v33, %v1956_v30  ;;  %v2244_v22 = vld [vmem:[#allocation5 + $0x3e0] sm:$0xf]  ;;  %v2232_v30 = vld [vmem:[#allocation5 + $0x3c8] sm:$0xf] }
  0x78   :  { %1284 = vmatpush.bf16.msrb.mxu2 %v2253_v49  ;;  %1247 = vmatpush.bf16.msra.mxu0 %v1941_v52  ;;  %v2101_v49 = vor.u32 %v2550_v40, %v2100_v39  ;;  %v2547_v52 = vld [vmem:[#allocation5 + $0x2b0] sm:$0xf0]  ;;  %v2208_v40 = vld [vmem:[#allocation5 + $0x398] sm:$0xf] }
  0x79   :  { %1260 = vmatpush.bf16.msra.mxu1 %v2037_v56  ;;  %v1776_v56 = vld [vmem:[#allocation5 + $0x38] sm:$0xf]  ;;  %v2089_v62 = vor.u32 %v2547_v52, %v2088_v51  ;;  %v2607_v51 = vld [vmem:[#allocation5 + $0x490] sm:$0xf0] }
  0x7a   :  { %1273 = vmatpush.bf16.msra.mxu3 %v2133_v57  ;;  %v2469_v57 = vld [vmem:[#allocation5 + $0x40] sm:$0xf0] }
  0x7b   :  { %1248 = vmatmul.bf16.vlgmr.msra.gmra.mxu0 %v2885_v5  ;;  %v1777_v2 = vor.u32 %v2469_v57, %v1776_v56  ;;  %v2574_v56 = vld [vmem:[#allocation5 + $0x388] sm:$0xf0]  ;;  %v2292_v57 = vld [vmem:[#allocation5 + $0x440] sm:$0xf] }
  0x7c   :  { %1285 = vmatpush.bf16.msrb.mxu2 %v2241_v0  ;;  %1261 = vmatmul.bf16.vlgmr.msra.gmra.mxu1 %v2894_v19  ;;  %v2076_v0 = vld [vmem:[#allocation5 + $0x290] sm:$0xf] }
  0x7d   :  { %1305 = vmatpush.bf16.msrb.mxu1 %v1837_v60  ;;  %1274 = vmatmul.bf16.vlgmr.msra.gmra.mxu3 %v2901_v28  ;;  %v1993_v60 = vor.u32 %v2523_v50, %v1992_v48  ;;  %v2040_v48 = vld [vmem:[#allocation5 + $0x248] sm:$0xf] }
  0x7e   :  { %1318 = vmatpush.bf16.msrb.mxu3 %v1933_v61  ;;  %1299 = vmatpush.bf16.msrb.mxu0 %v2325_v10  ;;  %v1980_v61 = vld [vmem:[#allocation5 + $0x1d0] sm:$0xf]  ;;  %v2490_v10 = vld [vmem:[#allocation5 + $0xe8] sm:$0xf0]  ;;  %v2328_v50 = vld [vmem:[#allocation5 + $0x488] sm:$0xf] }
  0x7f   :  { %v1981_v11 = vor.u32 %v2520_v63, %v1980_v61  ;;  %v1861_v18 = vor.u32 %v2490_v10, %v1860_v7  ;;  %v2329_v61 = vor.u32 %v2607_v51, %v2328_v50  ;;  %v2293_v63 = vor.u32 %v2598_v58, %v2292_v57  ;;  %v2172_v7 = vld [vmem:[#allocation5 + $0x350] sm:$0xf]  ;;  %v2592_v10 = vld [vmem:[#allocation5 + $0x418] sm:$0xf0] }
  0x80   :  { %1286 = vmatpush.bf16.msrb.mxu2 %v2229_v16  ;;  %v2541_v16 = vld [vmem:[#allocation5 + $0x280] sm:$0xf0] }
  0x81   :  { %1306 = vmatpush.bf16.msrb.mxu1 %v1825_v13  ;;  %v2077_v13 = vor.u32 %v2544_v1, %v2076_v0  ;;  %v2065_v32 = vor.u32 %v2541_v16, %v2064_v15  ;;  %v2184_v0 = vld [vmem:[#allocation5 + $0x368] sm:$0xf]  ;;  %v2571_v1 = vld [vmem:[#allocation5 + $0x370] sm:$0xf0]  ;;  %v2565_v15 = vld [vmem:[#allocation5 + $0x340] sm:$0xf0] }
  0x82   :  { %1319 = vmatpush.bf16.msrb.mxu3 %v1921_v14  ;;  %1331 = vmatpush.bf16.msra.mxu0 %v2029_v21  ;;  %v2517_v14 = vld [vmem:[#allocation5 + $0x1c0] sm:$0xf0]  ;;  %v2463_v21 = vld [vmem:[#allocation5 + $0x10] sm:$0xf0]  ;;  %v2185_v4 = vor.u32 %v2571_v1, %v2184_v0  ;;  %v2256_v16 = vld [vmem:[#allocation5 + $0x3f8] sm:$0xf] }
  0x83   :  { %1287 = vmatmul.bf16.vlgmr.msrb.gmra.mxu2 %v2903_v31  ;;  %v1753_v36 = vor.u32 %v2463_v21, %v1752_v20  ;;  %v2562_v21 = vld [vmem:[#allocation5 + $0x328] sm:$0xf0]  ;;  %v2619_v0 = vld [vmem:[#allocation8 + $0x58] sm:$0xff] }
  0x84   :  { %1344 = vmatpush.bf16.msra.mxu2 %v2125_v24  ;;  %v2220_v24 = vld [vmem:[#allocation5 + $0x3b0] sm:$0xf] }
  0x85   :  { %1307 = vmatpush.bf16.msrb.mxu1 %v1813_v27  ;;  %v2604_v27 = vld [vmem:[#allocation5 + $0x478] sm:$0xf0] }
  0x86   :  { %1320 = vmatpush.bf16.msrb.mxu3 %v1909_v29  ;;  %1332 = vmatpush.bf16.msra.mxu0 %v2017_v35  ;;  %v1969_v29 = vor.u32 %v2517_v14, %v1968_v12  ;;  %v2538_v35 = vld [vmem:[#allocation5 + $0x268] sm:$0xf0]  ;;  %v2317_v39 = vor.u32 %v2604_v27, %v2316_v26  ;;  %v2615_v14 = vld [vmem:[#allocation8 + $0x38] sm:$0xff]  ;;  %v2245_v26 = vor.u32 %v2586_v23, %v2244_v22  ;;  %v2136_v27 = vld [vmem:[#allocation5 + $0x308] sm:$0xf] }
  0x87   :  { %v2053_v46 = vor.u32 %v2538_v35, %v2052_v34  ;;  %v2612_v35 = vld [vmem:[#allocation8 + $0x20] sm:$0xff] }
  0x88   :  { %1345 = vmatpush.bf16.msra.mxu2 %v2113_v38  ;;  %v2221_v38 = vor.u32 %v2580_v25, %v2220_v24  ;;  %v2614_v24 = vld [vmem:[#allocation8 + $0x30] sm:$0xff] }
  0x89   :  { %1308 = vmatpush.bf16.msrb.mxu1 %v1801_v41  ;;  %v2577_v41 = vld [vmem:[#allocation5 + $0x3a0] sm:$0xf0] }
  0x8a   :  { %1321 = vmatpush.bf16.msrb.mxu3 %v1897_v42  ;;  %1333 = vmatpush.bf16.msra.mxu0 %v2005_v47  ;;  %v2304_v42 = vld [vmem:[#allocation5 + $0x458] sm:$0xf]  ;;  %v2511_v47 = vld [vmem:[#allocation5 + $0x190] sm:$0xf0]  ;;  %v2209_v52 = vor.u32 %v2577_v41, %v2208_v40  ;;  %v2609_v40 = vld [vmem:[#allocation8 + $0x8] sm:$0xff] }
  0x8b   :  { %2331 = vmatmul.msk.bf16.vlgmr.msrb.gmra.mxu0 %vm1120_vm0, %v2897_v54  ;;  %v1945_v59 = vor.u32 %v2511_v47, %v1944_v45  ;;  %v2923_v41 = vld [vmem:[#allocation7] sm:$0x7] }
  0x8c   :  { %1346 = vmatpush.bf16.msra.mxu2 %v2101_v49  ;;  %v2535_v49 = vld [vmem:[#allocation5 + $0x250] sm:$0xf0] }
  0x8d   :  { %1309 = vmatpush.bf16.msrb.mxu1 %v1789_v53  ;;  %v2305_v53 = vor.u32 %v2601_v43, %v2304_v42  ;;  %v2608_v43 = vld [vmem:[#allocation8] sm:$0xff] }
  0x8e   :  { %1322 = vmatpush.bf16.msrb.mxu3 %v1885_v55  ;;  %1334 = vmatpush.bf16.msra.mxu0 %v1993_v60  ;;  %v2196_v55 = vld [vmem:[#allocation5 + $0x380] sm:$0xf]  ;;  %v2041_v60 = vor.u32 %v2535_v49, %v2040_v48 }
  0x90   :  { %1347 = vmatpush.bf16.msra.mxu2 %v2089_v62  ;;  %v2197_v62 = vor.u32 %v2574_v56, %v2196_v55  ;;  %v2621_v55 = vld [vmem:[#allocation8 + $0x68] sm:$0xff] }
  0x91   :  { %1310 = vmatpush.bf16.msrb.mxu1 %v1777_v2  ;;  %v2280_v2 = vld [vmem:[#allocation5 + $0x428] sm:$0xf] }
  0x92   :  { %1323 = vmatpush.bf16.msrb.mxu3 %v1873_v3  ;;  %1335 = vmatpush.bf16.msra.mxu0 %v1981_v11  ;;  %v2595_v3 = vld [vmem:[#allocation5 + $0x430] sm:$0xf0] }
  0x93   :  { %v2281_v6 = vor.u32 %v2595_v3, %v2280_v2 }
  0x94   :  { %1348 = vmatpush.bf16.msra.mxu2 %v2077_v13  ;;  %v2160_v13 = vld [vmem:[#allocation5 + $0x338] sm:$0xf] }
  0x95   :  { %1311 = vmatpush.bf16.msrb.mxu1 %v1765_v17  ;;  %v2589_v17 = vld [vmem:[#allocation5 + $0x400] sm:$0xf0] }
  0x96   :  { %1324 = vmatpush.bf16.msrb.mxu3 %v1861_v18  ;;  %1336 = vmatpush.bf16.msra.mxu0 %v1969_v29  ;;  %v2161_v18 = vor.u32 %v2565_v15, %v2160_v13  ;;  %v2257_v20 = vor.u32 %v2589_v17, %v2256_v16  ;;  %v2559_v29 = vld [vmem:[#allocation5 + $0x310] sm:$0xf0] }
  0x97   :  { %v2137_v33 = vor.u32 %v2559_v29, %v2136_v27  ;;  %v2629_v27 = vld [vmem:[#allocation8 + $0xa8] sm:$0xff] }
  0x98   :  { %1349 = vmatpush.bf16.msra.mxu2 %v2065_v32  ;;  %v2583_v32 = vld [vmem:[#allocation5 + $0x3d0] sm:$0xf0] }
  0x99   :  { %1312 = vmatpush.bf16.msrb.mxu1 %v1753_v36  ;;  %v2233_v34 = vor.u32 %v2583_v32, %v2232_v30  ;;  %v2611_v36 = vld [vmem:[#allocation8 + $0x18] sm:$0xff] }
  0x9a   :  { %1325 = vmatpush.bf16.msrb.mxu3 %v1849_v37  ;;  %1337 = vmatpush.bf16.msra.mxu0 %v1957_v44  ;;  %v2610_v37 = vld [vmem:[#allocation8 + $0x10] sm:$0xff] }
  0x9c   :  { %1350 = vmatpush.bf16.msra.mxu2 %v2053_v46  ;;  %1313 = vmatmul.bf16.vlgmr.msrb.gmra.mxu1 %v2887_v8  ;;  %v2568_v8 = vld [vmem:[#allocation5 + $0x358] sm:$0xf0] }
  0x9d   :  { %1357 = vmatpush.bf16.msra.mxu1 %v2221_v38  ;;  %1326 = vmatmul.bf16.vlgmr.msrb.gmra.mxu3 %v2889_v9  ;;  %v2268_v9 = vld [vmem:[#allocation5 + $0x410] sm:$0xf]  ;;  %v2173_v11 = vor.u32 %v2568_v8, %v2172_v7 }
  0x9e   :  { %1370 = vmatpush.bf16.msra.mxu3 %v2317_v39  ;;  %1338 = vmatpush.bf16.msra.mxu0 %v1945_v59  ;;  %v2269_v12 = vor.u32 %v2592_v10, %v2268_v9  ;;  %v2617_v9 = vld [vmem:[#allocation8 + $0x48] sm:$0xff]  ;;  %v307_v10 = vperm.slane %v2923_v41, 1 }
  0xa0   :  { %1351 = vmatpush.bf16.msra.mxu2 %v2041_v60 }
  0xa1   :  { %1358 = vmatpush.bf16.msra.mxu1 %v2209_v52  ;;  %1339 = vmatmul.bf16.vlgmr.msra.gmra.mxu0 %v2885_v5  ;;  %v2148_v5 = vld [vmem:[#allocation5 + $0x320] sm:$0xf] }
  0xa2   :  { %1371 = vmatpush.bf16.msra.mxu3 %v2305_v53  ;;  %1390 = vmatpush.bf16.msrb.mxu0 %v2329_v61  ;;  %v2149_v25 = vor.u32 %v2562_v21, %v2148_v5  ;;  %v2622_v53 = vld [vmem:[#allocation8 + $0x70] sm:$0xff]  ;;  %v2631_v5 = vld [vmem:[#allocation8 + $0xb8] sm:$0xff] }
  0xa3   :  { %1352 = vmatmul.bf16.vlgmr.msra.gmra.mxu2 %v2894_v19  ;;  %v2613_v19 = vld [vmem:[#allocation8 + $0x28] sm:$0xff] }
  0xa4   :  { %1598 = vmatpush.bf16.msrb.mxu2 %v2615_v14 }
  0xa5   :  { %1359 = vmatpush.bf16.msra.mxu1 %v2197_v62  ;;  %v2620_v62 = vld [vmem:[#allocation8 + $0x60] sm:$0xff] }
  0xa6   :  { %1372 = vmatpush.bf16.msra.mxu3 %v2293_v63 }
  0xa8   :  { %1599 = vmatpush.bf16.msrb.mxu2 %v2614_v24  ;;  %v2630_v24 = vld [vmem:[#allocation8 + $0xb0] sm:$0xff] }
  0xa9   :  { %1360 = vmatpush.bf16.msra.mxu1 %v2185_v4  ;;  %v2618_v4 = vld [vmem:[#allocation8 + $0x50] sm:$0xff] }
  0xaa   :  { %1373 = vmatpush.bf16.msra.mxu3 %v2281_v6 }
  0xac   :  { %1600 = vmatpush.bf16.msrb.mxu2 %v2613_v19 }
  0xad   :  { %1361 = vmatpush.bf16.msra.mxu1 %v2173_v11  ;;  %v2616_v11 = vld [vmem:[#allocation8 + $0x40] sm:$0xff] }
  0xae   :  { %1374 = vmatpush.bf16.msra.mxu3 %v2269_v12 }
  0xb0   :  { %1601 = vmatpush.bf16.msrb.mxu2 %v2612_v35 }
  0xb1   :  { %1362 = vmatpush.bf16.msra.mxu1 %v2161_v18  ;;  %2332 = vmatmul.msk.bf16.vlgmr.msrb.gmra.mxu0 %vm1120_vm0, %v2897_v54  ;;  %v306_v54 = vperm.slane %v2923_v41, 0 }
  0xb2   :  { %1375 = vmatpush.bf16.msra.mxu3 %v2257_v20 }
  0xb4   :  { %1602 = vmatpush.bf16.msrb.mxu2 %v2611_v36  ;;  %v2628_v36 = vld [vmem:[#allocation8 + $0xa0] sm:$0xff] }
  0xb5   :  { %1363 = vmatpush.bf16.msra.mxu1 %v2149_v25 }
  0xb6   :  { %1376 = vmatpush.bf16.msra.mxu3 %v2245_v26 }
  0xb8   :  { %1603 = vmatpush.bf16.msrb.mxu2 %v2610_v37  ;;  %v2627_v37 = vld [vmem:[#allocation8 + $0x98] sm:$0xff] }
  0xb9   :  { %1364 = vmatpush.bf16.msra.mxu1 %v2137_v33 }
  0xba   :  { %1377 = vmatpush.bf16.msra.mxu3 %v2233_v34  ;;  %v1132_v38 = vpop.f32.mrf.mxu0 }
  0xbb   :  { %v1145_v39 = vpop.f32.mrf.mxu1  ;;  %v1133_v46 = vadd.f32 %v1132_v38, %v306_v54  ;;  %v2625_v54 = vld [vmem:[#allocation8 + $0x88] sm:$0xff] }
  0xbc   :  { %1365 = vmatmul.bf16.vlgmr.msra.gmra.mxu1 %v2901_v28  ;;  %1604 = vmatpush.bf16.msrb.mxu2 %v2609_v40  ;;  %v2623_v28 = vld [vmem:[#allocation8 + $0x78] sm:$0xff] }
  0xbd   :  { %1378 = vmatmul.bf16.vlgmr.msra.gmra.mxu3 %v2903_v31  ;;  %1611 = vmatpush.bf16.msra.mxu0 %v2623_v28  ;;  %v1146_v48 = vadd.f32 %v1145_v39, %v1133_v46  ;;  %v2626_v39 = vld [vmem:[#allocation8 + $0x90] sm:$0xff] }
  0xbe   :  { %1624 = vmatpush.bf16.msrb.mxu1 %v2631_v5  ;;  %v2655_v5 = vld [vmem:[%s2943_s6] ss:$0 sm:$0xff] }
  0xc0   :  { %1605 = vmatpush.bf16.msrb.mxu2 %v2608_v43 }
  0xc1   :  { %1612 = vmatpush.bf16.msra.mxu0 %v2622_v53 }
  0xc2   :  { %v1158_v42 = vpop.f32.mrf.mxu2  ;;  %v1134_v44 = vpop.f32.mrf.mxu0  ;;  %1625 = vmatpush.bf16.msrb.mxu1 %v2630_v24 }
  0xc3   :  { %v1147_v45 = vpop.f32.mrf.mxu1  ;;  %v1171_v31 = vpop.f32.mrf.mxu3  ;;  %v1159_v49 = vadd.f32 %v1158_v42, %v1146_v48  ;;  %v2624_v44 = vld [vmem:[#allocation8 + $0x80] sm:$0xff] }
  0xc5   :  { %v1172_v52 = vadd.f32 %v1171_v31, %v1159_v49  ;;  %1613 = vmatpush.bf16.msra.mxu0 %v2621_v55  ;;  %v308_v31 = vperm.slane %v2923_v41, 2 }
  0xc6   :  { %1626 = vmatpush.bf16.msrb.mxu1 %v2629_v27 }
  0xc9   :  { %1614 = vmatpush.bf16.msra.mxu0 %v2620_v62 }
  0xca   :  { %v1160_v47 = vpop.f32.mrf.mxu2  ;;  %1627 = vmatpush.bf16.msrb.mxu1 %v2628_v36 }
  0xcb   :  { %v1173_v50 = vpop.f32.mrf.mxu3 }
  0xcd   :  { %1615 = vmatpush.bf16.msra.mxu0 %v2619_v0 }
  0xce   :  { %1628 = vmatpush.bf16.msrb.mxu1 %v2627_v37 }
  0xd1   :  { %1616 = vmatpush.bf16.msra.mxu0 %v2618_v4  ;;  %v2636_v4 = vld [vmem:[#allocation10 + $0x20] sm:$0xff] }
  0xd2   :  { %v1210_v51 = vpop.f32.mrf.mxu2  ;;  %1629 = vmatpush.bf16.msrb.mxu1 %v2626_v39 }
  0xd5   :  { %1617 = vmatpush.bf16.msra.mxu0 %v2617_v9  ;;  %v2634_v9 = vld [vmem:[#allocation10 + $0x10] sm:$0xff] }
  0xd6   :  { %1630 = vmatpush.bf16.msrb.mxu1 %v2625_v54 }
  0xd8   :  { %v1184_v56 = vpop.f32.mrf.mxu0 }
  0xd9   :  { %v1185_v57 = vadd.f32 %v1184_v56, %v1172_v52  ;;  %1618 = vmatpush.bf16.msra.mxu0 %v2616_v11  ;;  %v2632_v11 = vld [vmem:[#allocation10] sm:$0xff] }
  0xda   :  { %v1212_v60 = vpop.f32.mrf.mxu2  ;;  %1631 = vmatpush.bf16.msrb.mxu1 %v2624_v44 }
  0xdb   :  { %v1197_v58 = vpop.f32.mrf.mxu1 }
  0xdc   :  { %v1198_v59 = vadd.f32 %v1197_v58, %v1185_v57 }
  0xde   :  { %v1211_v61 = vadd.f32 %v1210_v51, %v1198_v59 }
  0xe0   :  { %2656 = vtanh.f32 %v1211_v61  ;;  %v1223_v63 = vpop.f32.mrf.mxu3  ;;  %v1186_v1 = vpop.f32.mrf.mxu0 }
  0xe1   :  { %v1224_v13 = vadd.f32 %v1223_v63, %v307_v10  ;;  %v2639_v1 = vld [vmem:[#allocation10 + $0x38] sm:$0xff]  ;;  %v2633_v10 = vld [vmem:[#allocation10 + $0x8] sm:$0xff] }
  0xe2   :  { %1707 = vmatpush.bf16.msrb.mxu3 %v2639_v1 }
  0xe3   :  { %v1199_v2 = vpop.f32.mrf.mxu1 }
  0xe4   :  { %v2638_v2 = vld [vmem:[#allocation10 + $0x30] sm:$0xff] }
  0xe6   :  { %v2657_v3 = vpop.eup %2656  ;;  %v1236_v7 = vpop.f32.mrf.mxu2  ;;  %1708 = vmatpush.bf16.msrb.mxu3 %v2638_v2 }
  0xe7   :  { %v1399_v6 = vpack.c.bf16 %v2657_v3, %v2657_v3  ;;  %v1237_v14 = vadd.f32 %v1236_v7, %v1224_v13  ;;  %v2637_v3 = vld [vmem:[#allocation10 + $0x28] sm:$0xff] }
  0xe8   :  { %v1225_v8 = vpop.f32.mrf.mxu3 }
  0xe9   :  { %1606 = vmatmul.bf16.vlgmr.msrb.gmra.mxu2 %v1399_v6  ;;  %v2635_v6 = vld [vmem:[#allocation10 + $0x18] sm:$0xff] }
  0xea   :  { %1709 = vmatpush.bf16.msrb.mxu3 %v2637_v3 }
  0xee   :  { %v1238_v12 = vpop.f32.mrf.mxu2  ;;  %1710 = vmatpush.bf16.msrb.mxu3 %v2636_v4 }
  0xef   :  { %v2654_v12 = vld [vmem:[%s2941_s4] ss:$0 sm:$0xff] }
  0xf2   :  { %1711 = vmatpush.bf16.msrb.mxu3 %v2635_v6 }
  0xf6   :  { %1712 = vmatpush.bf16.msrb.mxu3 %v2634_v9 }
  0xf8   :  { %v1249_v15 = vpop.f32.mrf.mxu0 }
  0xf9   :  { %v1262_v16 = vpop.f32.mrf.mxu1  ;;  %v1250_v17 = vadd.f32 %v1249_v15, %v1237_v14 }
  0xfa   :  { %1713 = vmatpush.bf16.msrb.mxu3 %v2633_v10 }
  0xfb   :  { %v1263_v18 = vadd.f32 %v1262_v16, %v1250_v17 }
  0xfe   :  { %1714 = vmatpush.bf16.msrb.mxu3 %v2632_v11 }
 0x100   :  { %v1275_v20 = vpop.f32.mrf.mxu3  ;;  %v1251_v21 = vpop.f32.mrf.mxu0 }
 0x101   :  { %v1264_v22 = vpop.f32.mrf.mxu1  ;;  %v1276_v23 = vadd.f32 %v1275_v20, %v1263_v18 }
 0x106   :  { %v1288_v19 = vpop.f32.mrf.mxu2 }
 0x107   :  { %v1289_v25 = vadd.f32 %v1288_v19, %v1276_v23 }
 0x108   :  { %v1277_v26 = vpop.f32.mrf.mxu3  ;;  %v1301_v29 = vpop.f32.mrf.mxu0 }
 0x109   :  { %v1302_v30 = vadd.f32 %v1301_v29, %v1289_v25 }
 0x10b   :  { %2658 = vtanh.f32 %v1302_v30 }
 0x10e   :  { %v1290_v32 = vpop.f32.mrf.mxu2 }
 0x110   :  { %v1303_v33 = vpop.f32.mrf.mxu0 }
 0x111   :  { %v2659_v34 = vpop.eup %2658 }
 0x112   :  { %v1400_v35 = vpack.c.bf16 %v2659_v34, %v2659_v34 }
 0x114   :  { %1619 = vmatmul.bf16.vlgmr.msra.gmra.mxu0 %v1400_v35 }
 0x119   :  { %v1314_v38 = vpop.f32.mrf.mxu1 }
 0x11a   :  { %v1315_v47 = vadd.f32 %v1314_v38, %v308_v31 }
 0x11e   :  { %v1340_v42 = vpop.f32.mrf.mxu0 }
 0x120   :  { %v1327_v40 = vpop.f32.mrf.mxu3 }
 0x121   :  { %v1316_v43 = vpop.f32.mrf.mxu1  ;;  %v1328_v50 = vadd.f32 %v1327_v40, %v1315_v47 }
 0x123   :  { %v1341_v51 = vadd.f32 %v1340_v42, %v1328_v50 }
 0x126   :  { %v1353_v45 = vpop.f32.mrf.mxu2  ;;  %v1342_v46 = vpop.f32.mrf.mxu0 }
 0x127   :  { %v1354_v55 = vadd.f32 %v1353_v45, %v1341_v51 }
 0x128   :  { %v1329_v28 = vpop.f32.mrf.mxu3 }
 0x12e   :  { %v1355_v48 = vpop.f32.mrf.mxu2  ;;  %v1392_v49 = vpop.f32.mrf.mxu0 }
 0x136   :  { %v1394_v53 = vpop.f32.mrf.mxu0 }
 0x139   :  { %v1366_v52 = vpop.f32.mrf.mxu1 }
 0x13a   :  { %v1367_v56 = vadd.f32 %v1366_v52, %v1354_v55 }
 0x140   :  { %v1379_v57 = vpop.f32.mrf.mxu3 }
 0x141   :  { %v1380_v58 = vadd.f32 %v1379_v57, %v1367_v56  ;;  %v1368_v59 = vpop.f32.mrf.mxu1 }
 0x143   :  { %v1393_v60 = vadd.f32 %v1392_v49, %v1380_v58 }
 0x145   :  { %2660 = vtanh.f32 %v1393_v60 }
 0x148   :  { %v1381_v61 = vpop.f32.mrf.mxu3 }
 0x14b   :  { %v2661_v62 = vpop.eup %2660 }
 0x14c   :  { %v1401_v63 = vpack.c.bf16 %v2661_v62, %v2661_v62 }
 0x14e   :  { %1632 = vmatmul.bf16.vlgmr.msrb.gmra.mxu1 %v1401_v63 }
 0x16c   :  { %v1607_v0 = vpop.f32.mrf.mxu2 }
 0x16d   :  { %v1608_v13 = vadd.f32 %v2654_v12, %v1607_v0 }
 0x174   :  { %v1609_v41 = vpop.f32.mrf.mxu2 }
 0x191   :  { %v1620_v7 = vpop.f32.mrf.mxu0 }
 0x192   :  { %v1621_v14 = vadd.f32 %v1620_v7, %v1608_v13 }
 0x199   :  { %v1622_v8 = vpop.f32.mrf.mxu0 }
 0x1cb   :  { %v1633_v15 = vpop.f32.mrf.mxu1 }
 0x1cc   :  { %v1634_v16 = vadd.f32 %v1633_v15, %v1621_v14 }
 0x1ce   :  { %2662 = vtanh.f32 %v1634_v16 }
 0x1d3   :  { %v1635_v17 = vpop.f32.mrf.mxu1 }
 0x1d4   :  { %v2663_v18 = vpop.eup %2662 }
 0x1d5   :  { %v1638_v20 = vpack.c.bf16 %v2663_v18, %v2663_v18 }
 0x1d7   :  { %1715 = vmatmul.bf16.vlgmr.msrb.gmra.mxu3 %v1638_v20 }
 0x25a   :  { %v1716_v21 = vpop.f32.mrf.mxu3 }
 0x25b   :  { %v1717_v22 = vadd.f32 %v2655_v5, %v1716_v21 }
 0x25d   :  { %1720 = vst [vmem:[#allocation11] sm:$0xff] %v1717_v22 }
 0x262   :  { %v1718_v23 = vpop.f32.mrf.mxu3 }
 0x263   :  { %1724 = vsyncadd [#allocation4], 96  ;;  %s1727_s9 = sshll.u32 %s2944_s7, 4  ;;  %s2827_s10 = smov [#allocation11]   ;;  %s1728_s9 = int_to_ptr.hbm [resolvable:$true] %s1727_s9 }
 0x264   :  { %s1725_s11 = sshll.u32 %s2827_s10, 4  ;;  %s2828_s12 = smov 32   ;;  %s1726_s11 = int_to_ptr.vmem [resolvable:$true] %s1725_s11 }
 0x265   :  { %s2829_s13 = smov 2  }
 0x266   :  { %1733 = dma.vmem_to_hbm [thread:$0]  %s1726_s11, 32, %s1728_s9, [#allocation4], %s2828_s12, %s2828_s12, %s2829_s13  }
 0x267   :  { %2814 = dma.done.wait [#allocation4], 128  }
 0x268   :  { %2815 = vsyncadd [#allocation4], 4294967168 }
 0x269   :  { %1738 = vsyncpa [#allocation3], 1 }
 0x26a   :  { %1739 = vsyncpa [#allocation6], 1 }
 0x26b   :  { %1740 = vsyncpa [#allocation9], 1 }
 0x26c   :  { %1741 = vsyncpa [#allocation4], 1 }

</bundles_post_ra>
